<compile_context>
chip_gen: v7x
topology: tpu7x:2x2x1
jax: 0.10.0
libtpu: 0.0.40
codegen_flags: <defaults>
</compile_context>

<pallas_src>
import numpy as np
import jax
import jax.numpy as jnp
from jax.experimental import pallas as pl
from jax.experimental.pallas import tpu as pltpu


def _round_up(x, m):
    return ((x + m - 1) // m) * m


def _coupling_kernel(z_ref, mask_ref, w1_ref, b1_ref, w2_ref, b2_ref,
                     zout_ref, logdet_ref):
    z = z_ref[...]                      # [TB, D]  f32
    mask = mask_ref[...]                # [1, D]   f32 (binary 0/1)
    D = mask.shape[-1]

    masked_z = z * mask                 # VPU; overlaps with the MXU pass below
    unmasked_z = z - masked_z           # == (1 - mask) * z  (exact for a 0/1 mask)

    # Fused first layers of both nets (mask pre-folded into W1): one bf16 MXU pass.
    #   h = [ relu(masked_z @ W1s + b1s) | relu(masked_z @ W1t + b1t) ]   -> [TB, 2H]
    h = jnp.dot(z.astype(jnp.bfloat16), w1_ref[...],
                preferred_element_type=jnp.float32) + b1_ref[...]
    h = jnp.maximum(h, 0.0)

    # Block-diagonal second layer ((1-mask) pre-folded into the t block): one bf16 MXU pass.
    #   st = [ hs @ W2s + b2s | (1-mask)*(ht @ W2t + b2t) ]               -> [TB, 2D]
    st = jnp.dot(h.astype(jnp.bfloat16), w2_ref[...],
                 preferred_element_type=jnp.float32) + b2_ref[...]
    s = jnp.tanh(st[:, :D])             # EUP
    t_masked = st[:, D:]                # already (1 - mask) * t

    zout_ref[...] = masked_z + unmasked_z * jnp.exp(s) + t_masked

    # log|det J|[b] = sum_d (1-mask)_d * s[b, d], computed as a (1,D)x(TB,D) MXU
    # contraction so the result is produced directly as a lane-dense [1, TB] row.
    inv_mask = 1.0 - mask
    logdet_ref[...] = jnp.einsum('od,bd->ob', inv_mask, s,
                                 preferred_element_type=jnp.float32)


def masked_coupling_forward(z, mask, params, *, block_batch=512):
    """z: [B, D] float32; mask: [D] (0/1); params: dict of [in,out] weights and [out] biases."""
    B, D = z.shape
    H = params["w1s"].shape[1]
    if z.dtype != jnp.float32:
        z = z.astype(jnp.float32)

    mask_f32 = mask.astype(jnp.float32)
    inv_mask = 1.0 - mask_f32

    # ---- trace-time weight packing (would be cached in a real flow) ------------------
    # Layer 1 of scale & translation nets concatenated along the output dim, with the
    # input mask folded into the rows: [D, 2H].
    w1 = (mask_f32[:, None]
          * jnp.concatenate([params["w1s"], params["w1t"]], axis=1)).astype(jnp.bfloat16)
    b1 = jnp.concatenate([params["b1s"], params["b1t"]]).reshape(1, 2 * H).astype(jnp.float32)
    # Layer 2 packed block-diagonally: [hs | ht] @ [[W2s, 0], [0, W2t*(1-m)]] = [s_pre | t*(1-m)].
    zpad = jnp.zeros((H, D), jnp.float32)
    w2t_masked = params["w2t"] * inv_mask[None, :]
    w2 = jnp.concatenate(
        [jnp.concatenate([params["w2s"], zpad], axis=1),
         jnp.concatenate([zpad, w2t_masked], axis=1)], axis=0).astype(jnp.bfloat16)
    b2 = jnp.concatenate([params["b2s"], params["b2t"] * inv_mask]
                         ).reshape(1, 2 * D).astype(jnp.float32)
    mask2d = mask_f32.reshape(1, D)

    # ---- batch tiling -----------------------------------------------------------------
    TB = min(block_batch, _round_up(B, 8))
    if TB < B:                 # multiple tiles -> keep logdet (1, TB) blocks lane-aligned
        TB = _round_up(TB, 128)
    B_pad = _round_up(B, TB)
    z_in = z if B_pad == B else jnp.pad(z, ((0, B_pad - B), (0, 0)))
    num_tiles = B_pad // TB

    grid_spec = pltpu.PrefetchScalarGridSpec(
        num_scalar_prefetch=0,
        grid=(num_tiles,),
        in_specs=[
            pl.BlockSpec((TB, D), lambda i: (i, 0)),          # z tile (pipelined)
            pl.BlockSpec((1, D), lambda i: (0, 0)),           # mask   (resident)
            pl.BlockSpec((D, 2 * H), lambda i: (0, 0)),       # W1     (resident, bf16)
            pl.BlockSpec((1, 2 * H), lambda i: (0, 0)),       # b1     (resident)
            pl.BlockSpec((2 * H, 2 * D), lambda i: (0, 0)),   # W2     (resident, bf16)
            pl.BlockSpec((1, 2 * D), lambda i: (0, 0)),       # b2     (resident)
        ],
        out_specs=(
            pl.BlockSpec((TB, D), lambda i: (i, 0)),          # z_new tile
            pl.BlockSpec((1, TB), lambda i: (0, i)),          # lane-dense log_det row
        ),
    )

    z_new, logdet_row = pl.pallas_call(
        _coupling_kernel,
        out_shape=(
            jax.ShapeDtypeStruct((B_pad, D), jnp.float32),
            jax.ShapeDtypeStruct((1, B_pad), jnp.float32),
        ),
        grid_spec=grid_spec,
        compiler_params=pltpu.CompilerParams(
            dimension_semantics=("parallel",),      # batch axis shardable across TCs (v7x)
            vmem_limit_bytes=32 * 1024 * 1024,      # tiny working set; safe on v5e-v7x
        ),
    )(z_in, mask2d, w1, b1, w2, b2)

    return z_new[:B], logdet_row[0, :B]


def init_mask(D, mask_type, layer_idx):
    if mask_type == "chequerboard":
        side = int(np.sqrt(D))
        m = np.zeros((side, side), dtype=np.float32)
        m[::2, ::2] = 1
        m[1::2, 1::2] = 1
        if layer_idx % 2 == 1:
            m = 1 - m
        return jnp.asarray(m.flatten())
    elif mask_type == "random":
        return jnp.asarray(
            np.random.RandomState(0).randint(0, 2, size=(D,)).astype(np.float32))
    else:
        raise ValueError(f"Unknown mask type: {mask_type}")


def init_params(key, D, H):
    """Deterministic init mimicking nn.Linear default (uniform +- 1/sqrt(fan_in))."""
    ks = jax.random.split(key, 8)

    def lin(kw, kb, fan_in, fan_out):
        bound = 1.0 / np.sqrt(fan_in)
        w = jax.random.uniform(kw, (fan_in, fan_out), jnp.float32, -bound, bound)
        b = jax.random.uniform(kb, (fan_out,), jnp.float32, -bound, bound)
        return w, b

    w1s, b1s = lin(ks[0], ks[1], D, H)
    w2s, b2s = lin(ks[2], ks[3], H, D)
    w1t, b1t = lin(ks[4], ks[5], D, H)
    w2t, b2t = lin(ks[6], ks[7], H, D)
    return dict(w1s=w1s, b1s=b1s, w2s=w2s, b2s=b2s,
                w1t=w1t, b1t=b1t, w2t=w2t, b2t=b2t)


def reference_forward(z, mask, p):
    """Pure-f32 reference of the PyTorch module semantics."""
    masked_z = z * mask
    hs = jnp.maximum(masked_z @ p["w1s"] + p["b1s"], 0.0)
    s = jnp.tanh(hs @ p["w2s"] + p["b2s"])
    ht = jnp.maximum(masked_z @ p["w1t"] + p["b1t"], 0.0)
    t = ht @ p["w2t"] + p["b2t"]
    z_new = masked_z + (1 - mask) * (z * jnp.exp(s) + t)
    log_det = jnp.sum((1 - mask) * s, axis=-1)
    return z_new, log_det


def reference_forward_mixed(z, mask, p):
    """Same math with the kernel's bf16-operand / f32-accumulate matmul recipe.

    For a binary mask this is numerically identical to the kernel's folded-weight form.
    """
    bf = jnp.bfloat16
    f32 = jnp.float32
    masked_z = z * mask
    mzb = masked_z.astype(bf)
    hs = jnp.maximum(jnp.dot(mzb, p["w1s"].astype(bf), preferred_element_type=f32) + p["b1s"], 0.0)
    ht = jnp.maximum(jnp.dot(mzb, p["w1t"].astype(bf), preferred_element_type=f32) + p["b1t"], 0.0)
    s = jnp.tanh(jnp.dot(hs.astype(bf), p["w2s"].astype(bf), preferred_element_type=f32) + p["b2s"])
    t = jnp.dot(ht.astype(bf), p["w2t"].astype(bf), preferred_element_type=f32) + p["b2t"]
    z_new = masked_z + (1 - mask) * (z * jnp.exp(s) + t)
    log_det = jnp.sum((1 - mask) * s, axis=-1)
    return z_new, log_det


if __name__ == "__main__":
    D = 16          # flattened 4x4 "image" -> chequerboard mask
    H = 32          # num_hidden
    B = 256         # two 128-row batch tiles (exercises the grid / pipeline)

    key = jax.random.PRNGKey(0)
    kz, kp = jax.random.split(key)

    z = jax.random.normal(kz, (B, D), dtype=jnp.float32)
    mask = init_mask(D, "chequerboard", layer_idx=0)
    params = init_params(kp, D, H)

    z_new, log_det = masked_coupling_forward(z, mask, params, block_batch=128)
    jax.block_until_ready((z_new, log_det))

    # Tight check: same bf16-matmul / f32-accumulate recipe as the kernel.
    z_mix, ld_mix = reference_forward_mixed(z, mask, params)
    assert np.allclose(np.asarray(z_new), np.asarray(z_mix), rtol=1e-4, atol=1e-4)
    assert np.allclose(np.asarray(log_det), np.asarray(ld_mix), rtol=1e-4, atol=1e-4)

    # Loose check: pure-f32 reference; difference bounded by bf16 matmul-operand rounding.
    z_f32, ld_f32 = reference_forward(z, mask, params)
    assert np.allclose(np.asarray(z_new), np.asarray(z_f32), rtol=5e-2, atol=1e-1)
    assert np.allclose(np.asarray(log_det), np.asarray(ld_f32), rtol=5e-2, atol=1e-1)

    print("KERNEL_OK")
</pallas_src>

<mosaic_0001>
module attributes {stable_mosaic.version = 11 : i64} {
  func.func @_coupling_kernel(%arg0: i32, %arg1: memref<128x16xf32, #tpu.memory_space<vmem>>, %arg2: memref<1x16xf32, #tpu.memory_space<vmem>>, %arg3: memref<16x64xbf16, #tpu.memory_space<vmem>>, %arg4: memref<1x64xf32, #tpu.memory_space<vmem>>, %arg5: memref<64x32xbf16, #tpu.memory_space<vmem>>, %arg6: memref<1x32xf32, #tpu.memory_space<vmem>>, %arg7: memref<128x16xf32, #tpu.memory_space<vmem>>, %arg8: memref<1x128xf32, #tpu.memory_space<vmem>>) attributes {dimension_semantics = [#tpu.dimension_semantics<parallel>], iteration_bounds = array<i64: 2>, scalar_prefetch = 0 : i64, scratch_operands = 0 : i64, tpu.core_type = #tpu.core_type<tc>, window_params = [{transform_indices = @transform_0, window_bounds = array<i64: 128, 16>}, {pipeline_mode = #tpu.pipeline_mode<synchronous>, transform_indices = @transform_1, window_bounds = array<i64: 1, 16>}, {pipeline_mode = #tpu.pipeline_mode<synchronous>, transform_indices = @transform_2, window_bounds = array<i64: 16, 64>}, {pipeline_mode = #tpu.pipeline_mode<synchronous>, transform_indices = @transform_3, window_bounds = array<i64: 1, 64>}, {pipeline_mode = #tpu.pipeline_mode<synchronous>, transform_indices = @transform_4, window_bounds = array<i64: 64, 32>}, {pipeline_mode = #tpu.pipeline_mode<synchronous>, transform_indices = @transform_5, window_bounds = array<i64: 1, 32>}, {transform_indices = @transform_6, window_bounds = array<i64: 128, 16>}, {transform_indices = @transform_7, window_bounds = array<i64: 1, 128>}]} {
    %c0 = arith.constant 0 : index
    %c0_0 = arith.constant 0 : index
    %0 = vector.load %arg1[%c0, %c0_0] : memref<128x16xf32, #tpu.memory_space<vmem>>, vector<128x16xf32>
    %c0_1 = arith.constant 0 : index
    %c0_2 = arith.constant 0 : index
    %1 = vector.load %arg2[%c0_1, %c0_2] : memref<1x16xf32, #tpu.memory_space<vmem>>, vector<1x16xf32>
    %2 = vector.broadcast %1 : vector<1x16xf32> to vector<128x16xf32>
    %3 = arith.mulf %0, %2 : vector<128x16xf32>
    %4 = arith.subf %0, %3 : vector<128x16xf32>
    %5 = arith.truncf %0 : vector<128x16xf32> to vector<128x16xbf16>
    %c0_3 = arith.constant 0 : index
    %c0_4 = arith.constant 0 : index
    %6 = vector.load %arg3[%c0_3, %c0_4] : memref<16x64xbf16, #tpu.memory_space<vmem>>, vector<16x64xbf16>
    %cst = arith.constant dense<0.000000e+00> : vector<128x64xf32>
    %7 = tpu.matmul %5, %6, %cst {dimension_numbers = #tpu.dot_dimension_numbers<[1], [0], [0], [1], [0, 0, 1, 1], [], []>} : vector<128x16xbf16>, vector<16x64xbf16>, vector<128x64xf32> -> vector<128x64xf32>
    %c0_5 = arith.constant 0 : index
    %c0_6 = arith.constant 0 : index
    %8 = vector.load %arg4[%c0_5, %c0_6] : memref<1x64xf32, #tpu.memory_space<vmem>>, vector<1x64xf32>
    %9 = vector.broadcast %8 : vector<1x64xf32> to vector<128x64xf32>
    %10 = arith.addf %7, %9 : vector<128x64xf32>
    %cst_7 = arith.constant 0.000000e+00 : f32
    %11 = vector.broadcast %cst_7 : f32 to vector<128x64xf32>
    %12 = arith.maximumf %10, %11 : vector<128x64xf32>
    %13 = arith.truncf %12 : vector<128x64xf32> to vector<128x64xbf16>
    %c0_8 = arith.constant 0 : index
    %c0_9 = arith.constant 0 : index
    %14 = vector.load %arg5[%c0_8, %c0_9] : memref<64x32xbf16, #tpu.memory_space<vmem>>, vector<64x32xbf16>
    %cst_10 = arith.constant dense<0.000000e+00> : vector<128x32xf32>
    %15 = tpu.matmul %13, %14, %cst_10 {dimension_numbers = #tpu.dot_dimension_numbers<[1], [0], [0], [1], [0, 0, 1, 1], [], []>} : vector<128x64xbf16>, vector<64x32xbf16>, vector<128x32xf32> -> vector<128x32xf32>
    %c0_11 = arith.constant 0 : index
    %c0_12 = arith.constant 0 : index
    %16 = vector.load %arg6[%c0_11, %c0_12] : memref<1x32xf32, #tpu.memory_space<vmem>>, vector<1x32xf32>
    %17 = vector.broadcast %16 : vector<1x32xf32> to vector<128x32xf32>
    %18 = arith.addf %15, %17 : vector<128x32xf32>
    %19 = vector.extract_strided_slice %18 {offsets = [0, 0], sizes = [128, 16], strides = [1, 1]} : vector<128x32xf32> to vector<128x16xf32>
    %20 = math.tanh %19 : vector<128x16xf32>
    %21 = vector.extract_strided_slice %18 {offsets = [0, 16], sizes = [128, 16], strides = [1, 1]} : vector<128x32xf32> to vector<128x16xf32>
    %22 = math.exp %20 : vector<128x16xf32>
    %23 = arith.mulf %4, %22 : vector<128x16xf32>
    %24 = arith.addf %3, %23 : vector<128x16xf32>
    %25 = arith.addf %24, %21 : vector<128x16xf32>
    %c0_13 = arith.constant 0 : index
    %c0_14 = arith.constant 0 : index
    %26 = vector.load %arg7[%c0_13, %c0_14] : memref<128x16xf32, #tpu.memory_space<vmem>>, vector<128x16xf32>
    tpu.vector_store %arg7[%c0_13, %c0_14], %25 {strides = array<i32>} : memref<128x16xf32, #tpu.memory_space<vmem>>, vector<128x16xf32>,
    %cst_15 = arith.constant 1.000000e+00 : f32
    %27 = vector.broadcast %cst_15 : f32 to vector<1x16xf32>
    %28 = arith.subf %27, %1 : vector<1x16xf32>
    "tpu.trace_start"() <{level = 10 : i32, message = "od,bd->ob"}> : () -> ()
    %cst_16 = arith.constant dense<0.000000e+00> : vector<1x128xf32>
    %29 = tpu.matmul %28, %20, %cst_16 {dimension_numbers = #tpu.dot_dimension_numbers<[1], [1], [0], [0], [0, 0, 1, 0], [], []>} : vector<1x16xf32>, vector<128x16xf32>, vector<1x128xf32> -> vector<1x128xf32>
    "tpu.trace_stop"() : () -> ()
    %c0_17 = arith.constant 0 : index
    %c0_18 = arith.constant 0 : index
    %30 = vector.load %arg8[%c0_17, %c0_18] : memref<1x128xf32, #tpu.memory_space<vmem>>, vector<1x128xf32>
    tpu.vector_store %arg8[%c0_17, %c0_18], %29 {strides = array<i32>} : memref<1x128xf32, #tpu.memory_space<vmem>>, vector<1x128xf32>,
    return
  }
  func.func @transform_0(%arg0: i32) -> (i32, i32) {
    %c0_i32 = arith.constant 0 : i32
    %c0_i32_0 = arith.constant 0 : i32
    return %arg0, %c0_i32 : i32, i32
  }
  func.func @transform_1(%arg0: i32) -> (i32, i32) {
    %c0_i32 = arith.constant 0 : i32
    %c0_i32_0 = arith.constant 0 : i32
    %c0_i32_1 = arith.constant 0 : i32
    return %c0_i32, %c0_i32_0 : i32, i32
  }
  func.func @transform_2(%arg0: i32) -> (i32, i32) {
    %c0_i32 = arith.constant 0 : i32
    %c0_i32_0 = arith.constant 0 : i32
    %c0_i32_1 = arith.constant 0 : i32
    return %c0_i32, %c0_i32_0 : i32, i32
  }
  func.func @transform_3(%arg0: i32) -> (i32, i32) {
    %c0_i32 = arith.constant 0 : i32
    %c0_i32_0 = arith.constant 0 : i32
    %c0_i32_1 = arith.constant 0 : i32
    return %c0_i32, %c0_i32_0 : i32, i32
  }
  func.func @transform_4(%arg0: i32) -> (i32, i32) {
    %c0_i32 = arith.constant 0 : i32
    %c0_i32_0 = arith.constant 0 : i32
    %c0_i32_1 = arith.constant 0 : i32
    return %c0_i32, %c0_i32_0 : i32, i32
  }
  func.func @transform_5(%arg0: i32) -> (i32, i32) {
    %c0_i32 = arith.constant 0 : i32
    %c0_i32_0 = arith.constant 0 : i32
    %c0_i32_1 = arith.constant 0 : i32
    return %c0_i32, %c0_i32_0 : i32, i32
  }
  func.func @transform_6(%arg0: i32) -> (i32, i32) {
    %c0_i32 = arith.constant 0 : i32
    %c0_i32_0 = arith.constant 0 : i32
    return %arg0, %c0_i32 : i32, i32
  }
  func.func @transform_7(%arg0: i32) -> (i32, i32) {
    %c0_i32 = arith.constant 0 : i32
    %c0_i32_0 = arith.constant 0 : i32
    return %c0_i32, %arg0 : i32, i32
  }
}

</mosaic_0001>

<bundles_post_ra>
// kernel: tpu_custom_call.1
= control target key start
LH: loop header
LB: loop body
LE: loop exit
PB: predicated region body
PF: predicated region fallthrough
CT: control target
= control target key end

     0   :  { %13 = vsyncpa [#allocation3], 0  ;;  %s1918_s0 = inlined_call_operand.vmem [shape: f32[256,16], index: 0, kind: input, shape index: {}]   ;;  %s1919_s1 = inlined_call_operand.vmem [shape: f32[1,16], index: 1, kind: input, shape index: {}]   ;;  %s1920_s2 = inlined_call_operand.vmem [shape: bf16[16,64], index: 2, kind: input, shape index: {}]   ;;  %s1921_s3 = inlined_call_operand.vmem [shape: f32[1,64], index: 3, kind: input, shape index: {}]   ;;  %s1922_s4 = inlined_call_operand.vmem [shape: bf16[64,32], index: 4, kind: input, shape index: {}]   ;;  %s1923_s5 = inlined_call_operand.vmem [shape: f32[1,32], index: 5, kind: input, shape index: {}]   ;;  %s1924_s6 = inlined_call_operand.vmem [shape: f32[256,16], index: 6, kind: output, shape index: {0}]   ;;  %s1925_s7 = inlined_call_operand.hbm [shape: f32[1,256], index: 7, kind: output, shape index: {1}]  }
   0x1   :  { %15 = vsyncpa [#allocation3 + $0x1], 0  ;;  %s1498_s24 = smov 0   ;;  %s1500_s25 = smov 0  }
   0x2   :  { %s1502_s26 = smov 0   ;;  %s1504_s27 = smov 0  }
   0x3 LB: > { %s1078_s28 = sadd.s32 4294967295, %s1451_s27   ;;  %s1079_s29 = sadd.s32 4294967294, %s1451_s27   ;;  %s1451_s27 = sphi %s1504_s27, %s1933_s27   ;;  %s1447_s26 = sphi %s1502_s26, %s1932_s26   ;;  %s1443_s25 = sphi %s1500_s25, %s1931_s25   ;;  %s1439_s24 = sphi %s1498_s24, %s1930_s24  }
   0x4   : > { %s1521_s30 = sadd.s32 1, %s1451_s27   ;;  %s185_s8 = sadd.s32 1, %s1447_s26 }
   0x5   : > { %s182_s9 = ssub.s32 %s1451_s27, %s1521_s30  ;;  %p195_p0 = scmp.ne.s32.totalorder %s1447_s26, %s1443_s25 }
   0x6   : > { %p183_p1 = scmp.eq.s32.totalorder %s182_s9, 0  ;;  %p196_p2 = scmp.eq.s32.totalorder %s1078_s28, 1 }
   0x7   : > { %p201_p3 = scmp.ne.s32.totalorder %s1443_s25, %s1439_s24  ;;  %p202_p4 = scmp.eq.s32.totalorder %s1079_s29, 1 }
   0x8   : > { %s1531_s10 = scalar_select %p183_p1, %s1447_s26, %s185_s8  }
   0x9   : > { %p1533_p5 = por %p196_p2, %p195_p0  ;;  %p1537_p6 = por %p202_p4, %p201_p3 }
   0xa   : > { %p1082_p7 = scmp.ge.s32.totalorder %s1451_s27, 1  ;;  %p244_p8 = scmp.lt.s32.totalorder %s1451_s27, 3 }
   0xc   : > { %p245_p9 = pnand %p1082_p7, %p244_p8 }
   0xd   : > { %v1320_v0 = vld [vmem:[%s1920_s2] sm:$0xff] (!%p245_p9)   ;;  %s1546_s15 = sshll.u32 (!%p245_p9), %s1078_s28, 4  ;;  %vm371_vm0 = vcmask (!%p245_p9), 130048   ;;  %v1322_v11 = vld [vmem:[%s1922_s4 + $0x8] sm:$0xff] (!%p245_p9)   ;;  %v1323_v16 = vld [vmem:[%s1922_s4 + $0x10] sm:$0xff] (!%p245_p9)   ;;  %vm556_vm1 = vcmask (!%p245_p9), 523264  }
   0xe   : > { %248 = sbr.rel (%p245_p9) target bundleno = 770 (0x302), region = 44  ;;  %p281_p10 = scmp.lt.s32.totalorder (!%p245_p9), %s1546_s15, 31  ;;  %1168 = vmatprep.subr.bf16.mxu1 (!%p245_p9), %v1320_v0  ;;  %v1321_v1 = vld [vmem:[%s1922_s4] sm:$0xff] (!%p245_p9)   ;;  %v1324_v28 = vld [vmem:[%s1922_s4 + $0x18] sm:$0xff] (!%p245_p9)   ;;  %vm1454_vm2 = vmmov (!%p245_p9), 0   ;;  %vm1686_vm3 = vmpackc.low (!%p245_p9), %vm371_vm0, %vm371_vm0 }
   0xf   : > { %1169 = vmatpush3.bf16.msra.mxu1 (!%p245_p9), %v1320_v0  ;;  %v1087_v29 = vld [vmem:[%s1921_s3] ss:$0 sm:$0xff] (!%p245_p9)  ;;  %s1456_s21 = smov (!%p245_p9), 112   ;;  %s1878_s16 = scalar_lea.hbm (!%p245_p9), %s1925_s7, %s1546_s15 }
  0x10   : > { %1186 = vmatprep.subr.bf16.mxu1 (!%p245_p9), %v1321_v1 }
  0x15   : > { %s1553_s18 = scalar_select %p281_p10, %s1546_s15, 31 }
  0x17   : > { %s1084_s19 = sshll.u32 %s1553_s18, 3  ;;  %s278_s18 = sand.u32 1, %s1443_s25  }
  0x18   : > { %s1561_s22 = scalar_lea.vmem %s1918_s0, %s1084_s19  ;;  %s1804_s8 = scalar_lea.vmem %s1924_s6, %s1084_s19 }
  0x19   : > { %v1564_v2 = vld [vmem:[%s1561_s22] sm:$0xff]  ;;  %v1567_v3 = vld [vmem:[%s1561_s22 + $0x8] sm:$0xff]  ;;  %v1570_v4 = vld [vmem:[%s1561_s22 + $0x10] sm:$0xff]  ;;  %s279_s19 = scalar_lea.vmem [#allocation2], %s278_s18  ;;  %s983_s17 = scalar_lea.sflag [#allocation3], %s278_s18 }
  0x1a   : > { %v348_v5 = vpack.c.bf16 %v1567_v3, %v1564_v2  ;;  %v1575_v6 = vld [vmem:[%s1561_s22 + $0x18] sm:$0xff]  ;;  %v1578_v7 = vld [vmem:[%s1561_s22 + $0x20] sm:$0xff]  ;;  %v1581_v8 = vld [vmem:[%s1561_s22 + $0x28] sm:$0xff]  ;;  %s999_s9 = sshll.u32 %s279_s19, 4  ;;  %s1872_s9 = int_to_ptr.vmem [resolvable:$true] %s999_s9 }
  0x1b   : > { %v349_v9 = vpack.c.bf16 %v1575_v6, %v1570_v4  ;;  %v350_v10 = vpack.c.bf16 %v1581_v8, %v1578_v7  ;;  %v1594_v12 = vld [vmem:[%s1561_s22 + $0x30] sm:$0xff]  ;;  %v1597_v13 = vld [vmem:[%s1561_s22 + $0x38] sm:$0xff]  ;;  %v1600_v14 = vld [vmem:[%s1561_s22 + $0x40] sm:$0xff]  ;;  %s1389_s20 = scalar_lea.vmem %s1872_s9, 16 }
  0x1c   : > { %1170 = vmatprep.mubr.msk.bf16.mxu1 %vm371_vm0, %v348_v5  ;;  %v1603_v15 = vld [vmem:[%s1561_s22 + $0x48] sm:$0xff]  ;;  %v351_v17 = vpack.c.bf16 %v1597_v13, %v1594_v12  ;;  %v1615_v19 = vld [vmem:[%s1561_s22 + $0x50] sm:$0xff]  ;;  %v1618_v20 = vld [vmem:[%s1561_s22 + $0x58] sm:$0xff]  ;;  %p1390_p11 = scmp.ne.s32.totalorder %s1872_s9, %s1389_s20 }
  0x1d   : > { %1171 = vmatmul.mubr.msk.bf16.vlgmr.msra.gmra.mrb[0].mxu1 %vm371_vm0, %v349_v9  ;;  %v352_v18 = vpack.c.bf16 %v1603_v15, %v1600_v14  ;;  %v1621_v21 = vld [vmem:[%s1561_s22 + $0x60] sm:$0xff]  ;;  %v1624_v22 = vld [vmem:[%s1561_s22 + $0x68] sm:$0xff]  ;;  %v353_v23 = vpack.c.bf16 %v1618_v20, %v1615_v19  ;;  %v1633_v25 = vld [vmem:[%s1561_s22 + $0x70] sm:$0xff] }
  0x1e   : > { %1174 = vmatprep.mubr.msk.bf16.mxu1 %vm371_vm0, %v350_v10  ;;  %1187 = vmatpush3.bf16.msra.mxu1 %v1321_v1  ;;  %v354_v24 = vpack.c.bf16 %v1624_v22, %v1621_v21  ;;  %v1636_v26 = vld [vmem:[%s1561_s22 + $0x78] sm:$0xff]  ;;  %p1391_p12 = pnand %p1390_p11, %p1533_p5 }
  0x1f   : > { %1188 = vmatprep.subr.bf16.mxu1 %v1322_v11  ;;  %v355_v27 = vpack.c.bf16 %v1636_v26, %v1633_v25 }
  0x20   : > { %p1392_p13 = pneg %p1391_p12 }
  0x22   : > { %1189 = vmatpush3.bf16.msra.mxu1 %v1322_v11 }
  0x23   : > { %1190 = vmatprep.subr.bf16.mxu1 %v1323_v16 }
  0x25   : > { %1175 = vmatmul.mubr.msk.bf16.gmra.mrb[4].mxu1 %vm371_vm0, %v351_v17 }
  0x26   : > { %1178 = vmatprep.mubr.msk.bf16.mxu1 %vm371_vm0, %v352_v18  ;;  %1191 = vmatpush3.bf16.msra.mxu1 %v1323_v16 }
  0x27   : > { %1192 = vmatprep.subr.bf16.mxu1 %v1324_v28 }
  0x2a   : > { %1193 = vmatpush3.bf16.msra.mxu1 %v1324_v28 }
  0x2d   : > { %1179 = vmatmul.mubr.msk.bf16.gmra.mrb[8].mxu1 %vm371_vm0, %v353_v23 }
  0x2e   : > { %1182 = vmatprep.mubr.msk.bf16.mxu1 %vm371_vm0, %v354_v24 }
  0x35   : > { %1183 = vmatmul.mubr.msk.bf16.gmra.mrb[12].mxu1 %vm371_vm0, %v355_v27 }
  0xf0   : > { %v1172_v30 = vpop.f32.mrb[0].mxu1 }
  0xf1   : > { %v439_v31 = vadd.f32 %v1172_v30, %v1087_v29  ;;  %v430_v32 = vpop.f32.mrb[1].mxu1 }
  0xf2   : > { %v431_v33 = vadd.f32 %v1087_v29, %v430_v32  ;;  %v1173_v34 = vpop.f32.mrb[2].mxu1 }
  0xf3   : > { %v442_v35 = vadd.f32 %v1173_v34, %v1087_v29  ;;  %v433_v36 = vpop.f32.mrb[3].mxu1  ;;  %v495_v38 = vmax.f32 %v439_v31, 0.0 }
  0xf4   : > { %v434_v37 = vadd.f32 %v1087_v29, %v433_v36  ;;  %v493_v40 = vmax.f32 %v431_v33, 0.0 }
  0xf5   : > { %v496_v39 = vmax.f32 %v442_v35, 0.0 }
  0xf6   : > { %v494_v41 = vmax.f32 %v434_v37, 0.0 }
  0xf7   : > { %v510_v42 = vpack.c.bf16 %v496_v39, %v495_v38  ;;  %v1453_v39 = vmov 0.0|0.0  }
  0xf8   : > { %v509_v43 = vpack.c.bf16 %v494_v41, %v493_v40  ;;  %v1176_v44 = vpop.f32.mrb[4].mxu1  ;;  %1245 = vmatprep.subr.bf16.mxu0 %v1453_v39  ;;  %v1455_v40 = vmov 0.0   ;;  %v1659_v41 = vld [vmem:[%s1923_s5] ss:$0 sm:$0xff] }
  0xf9   : > { %v455_v45 = vadd.f32 %v1176_v44, %v1087_v29  ;;  %v446_v46 = vpop.f32.mrb[5].mxu1  ;;  %1242 = vmatprep.mubr.msk.f32.mxu0 %vm1454_vm2, %v1455_v40 }
  0xfa   : > { %v447_v47 = vadd.f32 %v1087_v29, %v446_v46  ;;  %v1177_v48 = vpop.f32.mrb[6].mxu1  ;;  %1194 = vmatprep.mubr.msk.bf16.mxu1 %vm556_vm1, %v509_v43 }
  0xfb   : > { %v499_v49 = vmax.f32 %v455_v45, 0.0  ;;  %v458_v50 = vadd.f32 %v1177_v48, %v1087_v29  ;;  %v449_v51 = vpop.f32.mrb[7].mxu1  ;;  %1195 = vmatmul.mubr.msk.bf16.vlgmr.msra.gmra.mrb[16].mxu1 %vm556_vm1, %v510_v42 }
  0xfc   : > { %v497_v52 = vmax.f32 %v447_v47, 0.0  ;;  %v450_v53 = vadd.f32 %v1087_v29, %v449_v51 }
  0xfd   : > { %v500_v54 = vmax.f32 %v458_v50, 0.0 }
  0xfe   : > { %v498_v55 = vmax.f32 %v450_v53, 0.0 }
  0xff   : > { %v512_v56 = vpack.c.bf16 %v500_v54, %v499_v49 }
 0x100   : > { %v511_v57 = vpack.c.bf16 %v498_v55, %v497_v52  ;;  %v1180_v58 = vpop.f32.mrb[8].mxu1 }
 0x101   : > { %v471_v59 = vadd.f32 %v1180_v58, %v1087_v29  ;;  %v462_v60 = vpop.f32.mrb[9].mxu1 }
 0x102   : > { %v463_v61 = vadd.f32 %v1087_v29, %v462_v60  ;;  %v1181_v62 = vpop.f32.mrb[10].mxu1  ;;  %1198 = vmatprep.mubr.msk.bf16.mxu1 %vm556_vm1, %v511_v57 }
 0x103   : > { %v503_v63 = vmax.f32 %v471_v59, 0.0  ;;  %v474_v0 = vadd.f32 %v1181_v62, %v1087_v29  ;;  %v465_v1 = vpop.f32.mrb[11].mxu1  ;;  %1199 = vmatmul.mubr.msk.bf16.gmra.mrb[20].mxu1 %vm556_vm1, %v512_v56 }
 0x104   : > { %v501_v5 = vmax.f32 %v463_v61, 0.0  ;;  %v466_v9 = vadd.f32 %v1087_v29, %v465_v1 }
 0x105   : > { %v504_v10 = vmax.f32 %v474_v0, 0.0 }
 0x106   : > { %v502_v11 = vmax.f32 %v466_v9, 0.0 }
 0x107   : > { %v514_v16 = vpack.c.bf16 %v504_v10, %v503_v63 }
 0x108   : > { %v513_v17 = vpack.c.bf16 %v502_v11, %v501_v5  ;;  %v1184_v18 = vpop.f32.mrb[12].mxu1 }
 0x109   : > { %v487_v23 = vadd.f32 %v1184_v18, %v1087_v29  ;;  %v478_v24 = vpop.f32.mrb[13].mxu1 }
 0x10a   : > { %v479_v27 = vadd.f32 %v1087_v29, %v478_v24  ;;  %v1185_v28 = vpop.f32.mrb[14].mxu1  ;;  %1202 = vmatprep.mubr.msk.bf16.mxu1 %vm556_vm1, %v513_v17 }
 0x10b   : > { %v507_v30 = vmax.f32 %v487_v23, 0.0  ;;  %v490_v31 = vadd.f32 %v1185_v28, %v1087_v29  ;;  %v481_v32 = vpop.f32.mrb[15].mxu1  ;;  %1203 = vmatmul.mubr.msk.bf16.gmra.mrb[24].mxu1 %vm556_vm1, %v514_v16 }
 0x10c   : > { %v505_v33 = vmax.f32 %v479_v27, 0.0  ;;  %v482_v34 = vadd.f32 %v1087_v29, %v481_v32 }
 0x10d   : > { %v508_v35 = vmax.f32 %v490_v31, 0.0 }
 0x10e   : > { %v506_v36 = vmax.f32 %v482_v34, 0.0 }
 0x10f   : > { %v516_v37 = vpack.c.bf16 %v508_v35, %v507_v30 }
 0x110   : > { %v515_v38 = vpack.c.bf16 %v506_v36, %v505_v33 }
 0x112   : > { %1206 = vmatprep.mubr.msk.bf16.mxu1 %vm556_vm1, %v515_v38 }
 0x113   : > { %1207 = vmatmul.mubr.msk.bf16.gmra.mrb[28].mxu1 %vm556_vm1, %v516_v37 }
 0x1ce   : > { %v1196_v29 = vpop.f32.mrb[16].mxu1 }
 0x1cf   : > { %v624_v42 = vadd.f32 %v1196_v29, %v1659_v41  ;;  %v615_v43 = vpop.f32.mrb[17].mxu1 }
 0x1d0   : > { %v616_v44 = vadd.f32 %v1659_v41, %v615_v43  ;;  %v1197_v45 = vpop.f32.mrb[18].mxu1 }
 0x1d1   : > { %1325 = vtanh.f32 %v624_v42  ;;  %v627_v46 = vadd.f32 %v1197_v45, %v1659_v41  ;;  %778 = vrot.lane.b32.xlu1 %v624_v42, %s1456_s21  ;;  %v618_v47 = vpop.f32.mrb[19].mxu1 }
 0x1d2   : > { %1327 = vtanh.f32 %v616_v44  ;;  %v619_v48 = vadd.f32 %v1659_v41, %v618_v47  ;;  %774 = vrot.lane.b32.xlu0 %v616_v44, %s1456_s21 }
 0x1d3   : > { %1329 = vtanh.f32 %v627_v46 }
 0x1d4   : > { %1331 = vtanh.f32 %v619_v48 }
 0x1d5   : > { %780 = vrot.lane.b32.xlu1 %v627_v46, %s1456_s21 }
 0x1d6   : > { %v1200_v49 = vpop.f32.mrb[20].mxu1  ;;  %776 = vrot.lane.b32.xlu0 %v619_v48, %s1456_s21 }
 0x1d7   : > { %v640_v50 = vadd.f32 %v1200_v49, %v1659_v41  ;;  %v631_v51 = vpop.f32.mrb[21].mxu1 }
 0x1d8   : > { %v632_v52 = vadd.f32 %v1659_v41, %v631_v51  ;;  %v1201_v53 = vpop.f32.mrb[22].mxu1  ;;  %v309_v51 = vld [vmem:[%s1919_s1] sm:$0x1] }
 0x1d9   : > { %1333 = vtanh.f32 %v640_v50  ;;  %v643_v54 = vadd.f32 %v1201_v53, %v1659_v41  ;;  %v634_v55 = vpop.f32.mrb[23].mxu1  ;;  %v311_v53 = vlaneseq }
 0x1da   : > { %1335 = vtanh.f32 %v632_v52  ;;  %v635_v56 = vadd.f32 %v1659_v41, %v634_v55  ;;  %786 = vrot.lane.b32.xlu0 %v640_v50, %s1456_s21 }
 0x1db   : > { %v1674_v57 = vpop.eup %1325  ;;  %1337 = vtanh.f32 %v643_v54  ;;  %788 = vrot.lane.b32.xlu1 %v643_v54, %s1456_s21  ;;  %v312_v54 = vshrl.u32 %v311_v53, 7 }
 0x1dc   : > { %v1677_v58 = vpop.eup %1327  ;;  %1339 = vtanh.f32 %v635_v56  ;;  %v698_v55 = vmul.f32 1.442695, %v1674_v57 }
 0x1dd   : > { %v1679_v59 = vpop.eup %1329 }
 0x1de   : > { %v1681_v60 = vpop.eup %1331  ;;  %v1204_v61 = vpop.f32.mrb[24].mxu1  ;;  %782 = vrot.lane.b32.xlu0 %v632_v52, %s1456_s21  ;;  %v1250_v63 = vpack.c.bf16 %v1679_v59, %v1674_v57  ;;  %v854_v52 = vsub.f32 1.0, %v309_v51 }
 0x1df   : > { %v656_v0 = vadd.f32 %v1204_v61, %v1659_v41  ;;  %v647_v1 = vpop.f32.mrb[25].mxu1  ;;  %784 = vrot.lane.b32.xlu1 %v635_v56, %s1456_s21  ;;  %v1246_v5 = vpack.c.bf16 %v1681_v60, %v1677_v58  ;;  %v694_v56 = vmul.f32 1.442695, %v1677_v58  ;;  %v313_v61 = vsub.s32 0, %v312_v54 }
 0x1e0   : > { %v1205_v9 = vpop.f32.mrb[26].mxu1  ;;  %v648_v10 = vadd.f32 %v1659_v41, %v647_v1  ;;  %v696_v62 = vmul.f32 1.442695, %v1681_v60 }
 0x1e1   : > { %v659_v11 = vadd.f32 %v1205_v9, %v1659_v41  ;;  %1248 = vmatpush3.bf16.xpose.msk.msra.mxu0 %vm1686_vm3, %v1246_v5  ;;  %v650_v16 = vpop.f32.mrb[27].mxu1  ;;  %1341 = vtanh.f32 %v656_v0 }
 0x1e2   : > { %794 = vrot.lane.b32.xlu0 %v656_v0, %s1456_s21  ;;  %1249 = vmatprep.subr.bf16.mxu0 %v1453_v39  ;;  %1343 = vtanh.f32 %v648_v10  ;;  %v651_v18 = vadd.f32 %v1659_v41, %v650_v16 }
 0x1e3   : > { %v1702_v17 = vpop.eup %1333  ;;  %796 = vrot.lane.b32.xlu1 %v659_v11, %s1456_s21  ;;  %1345 = vtanh.f32 %v659_v11 }
 0x1e4   : > { %v1706_v23 = vpop.eup %1335  ;;  %1347 = vtanh.f32 %v651_v18  ;;  %v706_v0 = vmul.f32 1.442695, %v1702_v17 }
 0x1e5   : > { %v1708_v24 = vpop.eup %1337 }
 0x1e6   : > { %v1710_v27 = vpop.eup %1339  ;;  %v1208_v28 = vpop.f32.mrb[28].mxu1  ;;  %790 = vrot.lane.b32.xlu0 %v648_v10, %s1456_s21  ;;  %v1258_v30 = vpack.c.bf16 %v1708_v24, %v1702_v17  ;;  %v708_v57 = vmul.f32 1.442695, %v1708_v24 }
 0x1e7   : > { %v663_v31 = vpop.f32.mrb[29].mxu1  ;;  %792 = vrot.lane.b32.xlu1 %v651_v18, %s1456_s21  ;;  %v1254_v32 = vpack.c.bf16 %v1710_v27, %v1706_v23  ;;  %v672_v33 = vadd.f32 %v1208_v28, %v1659_v41  ;;  %v704_v10 = vmul.f32 1.442695, %v1710_v27 }
 0x1e8   : > { %v664_v34 = vadd.f32 %v1659_v41, %v663_v31  ;;  %v1209_v35 = vpop.f32.mrb[30].mxu1 }
 0x1e9   : > { %v666_v36 = vpop.f32.mrb[31].mxu1  ;;  %1252 = vmatpush3.bf16.xpose.msk.msra.mxu0 %vm1686_vm3, %v1250_v63  ;;  %1349 = vtanh.f32 %v672_v33  ;;  %v675_v37 = vadd.f32 %v1209_v35, %v1659_v41  ;;  %v1772_v63 = vrot.slane %v309_v51, %v313_v61 }
 0x1ea   : > { %v667_v38 = vadd.f32 %v1659_v41, %v666_v36  ;;  %798 = vrot.lane.b32.xlu0 %v664_v34, %s1456_s21  ;;  %1253 = vmatprep.subr.bf16.mxu0 %v1453_v39  ;;  %1351 = vtanh.f32 %v664_v34 }
 0x1eb   : > { %v1342_v40 = vpop.eup %1341  ;;  %1353 = vtanh.f32 %v675_v37  ;;  %v318_v1 = vmul.f32 %v1772_v63, %v1570_v4  ;;  %v316_v58 = vmul.f32 %v1772_v63, %v1564_v2  ;;  %v319_v60 = vmul.f32 %v1772_v63, %v1575_v6 }
 0x1ec   : > { %800 = vrot.lane.b32.xlu1 %v667_v38, %s1456_s21  ;;  %v1727_v29 = vpop.eup %1343  ;;  %1355 = vtanh.f32 %v667_v38  ;;  %v317_v16 = vmul.f32 %v1772_v63, %v1567_v3  ;;  %v322_v18 = vmul.f32 %v1772_v63, %v1594_v12  ;;  %v320_v34 = vmul.f32 %v1772_v63, %v1578_v7 }
 0x1ed   : > { %v1346_v42 = vpop.eup %1345  ;;  %1357 = vpow2.f32 %v698_v55  ;;  %v334_v5 = vsub.f32 %v1570_v4, %v318_v1  ;;  %v332_v11 = vsub.f32 %v1564_v2, %v316_v58  ;;  %v335_v4 = vsub.f32 %v1575_v6, %v319_v60 }
 0x1ee   : > { %802 = vrot.lane.b32.xlu0 %v672_v33, %s1456_s21  ;;  %v1730_v43 = vpop.eup %1347  ;;  %v1266_v44 = vpack.c.bf16 %v1346_v42, %v1342_v40  ;;  %1359 = vpow2.f32 %v694_v56  ;;  %v333_v27 = vsub.f32 %v1567_v3, %v317_v16  ;;  %v338_v33 = vsub.f32 %v1594_v12, %v322_v18 }
 0x1ef   : > { %v1262_v41 = vpack.c.bf16 %v1730_v43, %v1727_v29  ;;  %v710_v35 = vmul.f32 1.442695, %v1727_v29  ;;  %v326_v53 = vmul.f32 %v1772_v63, %v1615_v19 }
 0x1f0   : > { %804 = vrot.lane.b32.xlu1 %v675_v37, %s1456_s21  ;;  %v712_v37 = vmul.f32 1.442695, %v1730_v43  ;;  %s1457_s21 = smov [#allocation2]  }
 0x1f1   : > { %1256 = vmatpush3.bf16.xpose.msk.msra.mxu0 %vm1686_vm3, %v1254_v32  ;;  %v323_v32 = vmul.f32 %v1772_v63, %v1597_v13  ;;  %s1393_s22 = sshll.u32 %s1457_s21, 4  ;;  %s1394_s22 = int_to_ptr.vmem [resolvable:$false] %s1393_s22 }
 0x1f2   : > { %1257 = vmatprep.subr.bf16.mxu0 %v1453_v39  ;;  %s1395_s23 = scalar_lea.vmem %s1394_s22, 32  ;;  %p1396_p0 = scmp.lt.s32.totalorder %s1872_s9, %s1394_s22 }
 0x1f3   : > { %v1738_v45 = vpop.eup %1349  ;;  %v339_v29 = vsub.f32 %v1597_v13, %v323_v32  ;;  %p1397_p1 = scmp.lt.s32.totalorder %s1395_s23, %s1389_s20 }
 0x1f4   : > { %v1740_v46 = vpop.eup %1351 }
 0x1f5   : > { %v1742_v47 = vpop.eup %1353  ;;  %v718_v51 = vmul.f32 1.442695, %v1740_v46  ;;  %p1398_p2 = por %p1397_p1, %p1396_p0 }
 0x1f6   : > { %v1744_v48 = vpop.eup %1355  ;;  %v1274_v49 = vpack.c.bf16 %v1742_v47, %v1738_v45 }
 0x1f7   : > { %v1270_v50 = vpack.c.bf16 %v1744_v48, %v1740_v46  ;;  %v1358_v9 = vpop.eup %1357  ;;  %v720_v46 = vmul.f32 1.442695, %v1744_v48  ;;  %p1399_p3 = pnand %p1398_p2, %p1392_p13 }
 0x1f8   : > { %v1360_v17 = vpop.eup %1359  ;;  %v728_v24 = vmul.f32 %v1358_v9, %v334_v5  ;;  %v325_v5 = vmul.f32 %v1772_v63, %v1603_v15 }
 0x1f9   : > { %1260 = vmatpush3.bf16.xpose.msk.msra.mxu0 %vm1686_vm3, %v1258_v30  ;;  %v716_v30 = vmul.f32 1.442695, %v1346_v42  ;;  %v726_v31 = vmul.f32 %v1360_v17, %v332_v11 }
 0x1fa   : > { %1261 = vmatprep.subr.bf16.mxu0 %v1453_v39  ;;  %v744_v6 = vadd.f32 %v728_v24, %v318_v1 }
 0x1fb   : > { %v742_v12 = vadd.f32 %v726_v31, %v316_v58  ;;  %v722_v58 = vmul.f32 1.442695, %v1738_v45  ;;  %v724_v45 = vmul.f32 1.442695, %v1742_v47  ;;  %v328_v47 = vmul.f32 %v1772_v63, %v1621_v21 }
 0x201   : > { %1264 = vmatpush3.bf16.xpose.msk.msra.mxu0 %vm1686_vm3, %v1262_v41  ;;  %v321_v41 = vmul.f32 %v1772_v63, %v1581_v8 }
 0x202   : > { %1265 = vmatprep.subr.bf16.mxu0 %v1453_v39 }
 0x209   : > { %1268 = vmatpush3.bf16.xpose.msk.msra.mxu0 %vm1686_vm3, %v1266_v44 }
 0x20a   : > { %1269 = vmatprep.subr.bf16.mxu0 %v1453_v39 }
 0x211   : > { %1272 = vmatpush3.bf16.xpose.msk.msra.mxu0 %vm1686_vm3, %v1270_v50  ;;  %v336_v50 = vsub.f32 %v1578_v7, %v320_v34  ;;  %v327_v7 = vmul.f32 %v1772_v63, %v1618_v20 }
 0x212   : > { %1273 = vmatprep.subr.bf16.mxu0 %v1453_v39  ;;  %v700_v39 = vmul.f32 1.442695, %v1679_v59  ;;  %v702_v59 = vmul.f32 1.442695, %v1706_v23  ;;  %v714_v23 = vmul.f32 1.442695, %v1342_v40 }
 0x213   : > { %v343_v9 = vsub.f32 %v1618_v20, %v327_v7 }
 0x214   : > { %1361 = vpow2.f32 %v700_v39 }
 0x215   : > { %1363 = vpow2.f32 %v696_v62 }
 0x216   : > { %1365 = vpow2.f32 %v706_v0  ;;  %v337_v0 = vsub.f32 %v1581_v8, %v321_v41  ;;  %v342_v8 = vsub.f32 %v1615_v19, %v326_v53 }
 0x217   : > { %1367 = vpow2.f32 %v708_v57 }
 0x218   : > { %1369 = vpow2.f32 %v702_v59  ;;  %v324_v59 = vmul.f32 %v1772_v63, %v1600_v14 }
 0x219   : > { %1276 = vmatpush3.bf16.xpose.msk.msra.mxu0 %vm1686_vm3, %v1274_v49  ;;  %1371 = vpow2.f32 %v704_v10 }
 0x21a   : > { %1373 = vpow2.f32 %v714_v23  ;;  %v340_v20 = vsub.f32 %v1600_v14, %v324_v59 }
 0x21b   : > { %1375 = vpow2.f32 %v716_v30 }
 0x21c   : > { %1377 = vpow2.f32 %v710_v35 }
 0x21d   : > { %1379 = vpow2.f32 %v712_v37 }
 0x21e   : > { %v1362_v28 = vpop.eup %1361  ;;  %1381 = vpow2.f32 %v718_v51 }
 0x21f   : > { %v1364_v2 = vpop.eup %1363  ;;  %v729_v36 = vmul.f32 %v1362_v28, %v335_v4  ;;  %1383 = vpow2.f32 %v720_v46 }
 0x220   : > { %1243 = vmatmul.mubr.msk.f32.vlgmr.msra.gmra.mrb[0].mxu0 %vm371_vm0, %v854_v52  ;;  %v727_v38 = vmul.f32 %v1364_v2, %v333_v27  ;;  %v1366_v40 = vpop.eup %1365  ;;  %1385 = vpow2.f32 %v722_v58 }
 0x221   : > { %v1368_v43 = vpop.eup %1367  ;;  %v745_v52 = vadd.f32 %v729_v36, %v319_v60  ;;  %v732_v55 = vmul.f32 %v1366_v40, %v338_v33  ;;  %1387 = vpow2.f32 %v724_v45 }
 0x222   : > { %v743_v54 = vadd.f32 %v727_v38, %v317_v16  ;;  %v1370_v56 = vpop.eup %1369  ;;  %v733_v62 = vmul.f32 %v1368_v43, %v339_v29  ;;  %v331_v43 = vmul.f32 %v1772_v63, %v1636_v26 }
 0x223   : > { %v1372_v1 = vpop.eup %1371  ;;  %v748_v48 = vadd.f32 %v732_v55, %v322_v18  ;;  %v730_v60 = vmul.f32 %v1370_v56, %v336_v50 }
 0x224   : > { %v1374_v10 = vpop.eup %1373  ;;  %v749_v16 = vadd.f32 %v733_v62, %v323_v32  ;;  %v731_v17 = vmul.f32 %v1372_v1, %v337_v0  ;;  %v341_v32 = vsub.f32 %v1603_v15, %v325_v5 }
 0x225   : > { %v1376_v23 = vpop.eup %1375  ;;  %v746_v18 = vadd.f32 %v730_v60, %v320_v34  ;;  %v736_v19 = vmul.f32 %v1374_v10, %v342_v8 }
 0x226   : > { %v1378_v30 = vpop.eup %1377  ;;  %v747_v27 = vadd.f32 %v731_v17, %v321_v41  ;;  %v737_v2 = vmul.f32 %v1376_v23, %v343_v9 }
 0x227   : > { %v1380_v33 = vpop.eup %1379  ;;  %v752_v36 = vadd.f32 %v736_v19, %v326_v53  ;;  %v734_v37 = vmul.f32 %v1378_v30, %v340_v20 }
 0x228   : > { %v1382_v38 = vpop.eup %1381  ;;  %v753_v40 = vadd.f32 %v737_v2, %v327_v7 }
 0x229   : > { %v750_v50 = vadd.f32 %v734_v37, %v324_v59 }
 0x243   : > { %v779_v3 = vpop.permute.xlu1 %778 }
 0x244   : > { %v824_v42 = vadd.f32 %v779_v3, %v744_v6  ;;  %v775_v44 = vpop.permute.xlu0 %774  ;;  %v329_v6 = vmul.f32 %v1772_v63, %v1624_v22  ;;  %v344_v3 = vsub.f32 %v1621_v21, %v328_v47 }
 0x245   : > { %v822_v49 = vadd.f32 %v775_v44, %v742_v12  ;;  %v330_v12 = vmul.f32 %v1772_v63, %v1633_v25  ;;  %v347_v63 = vsub.f32 %v1636_v26, %v331_v43 }
 0x246   : > { %840 = vst.msk [vmem:[%s1804_s8 + $0x10] sm:$0xff] %vm371_vm0, %v824_v42  ;;  %v735_v42 = vmul.f32 %v1380_v33, %v341_v32  ;;  %v345_v41 = vsub.f32 %v1624_v22, %v329_v6  ;;  %v738_v51 = vmul.f32 %v1382_v38, %v344_v3 }
 0x247   : > { %838 = vst.msk [vmem:[%s1804_s8] sm:$0xff] %vm371_vm0, %v822_v49  ;;  %v781_v13 = vpop.permute.xlu1 %780  ;;  %v1384_v49 = vpop.eup %1383 }
 0x248   : > { %v825_v61 = vadd.f32 %v781_v13, %v745_v52  ;;  %v777_v39 = vpop.permute.xlu0 %776  ;;  %v346_v52 = vsub.f32 %v1633_v25, %v330_v12  ;;  %v1386_v53 = vpop.eup %1385  ;;  %v739_v7 = vmul.f32 %v1384_v49, %v345_v41 }
 0x249   : > { %v823_v57 = vadd.f32 %v777_v39, %v743_v54  ;;  %v751_v54 = vadd.f32 %v735_v42, %v325_v5  ;;  %v1388_v56 = vpop.eup %1387 }
 0x24a   : > { %841 = vst.msk [vmem:[%s1804_s8 + $0x18] sm:$0xff] %vm371_vm0, %v825_v61  ;;  %v754_v61 = vadd.f32 %v738_v51, %v328_v47  ;;  %v740_v39 = vmul.f32 %v1386_v53, %v346_v52  ;;  %v755_v0 = vadd.f32 %v739_v7, %v329_v6  ;;  %v741_v1 = vmul.f32 %v1388_v56, %v347_v63 }
 0x24b   : > { %839 = vst.msk [vmem:[%s1804_s8 + $0x8] sm:$0xff] %vm371_vm0, %v823_v57 }
 0x24c   : > { %v787_v11 = vpop.permute.xlu0 %786  ;;  %v756_v58 = vadd.f32 %v740_v39, %v330_v12 }
 0x24d   : > { %v828_v24 = vadd.f32 %v787_v11, %v748_v48  ;;  %v789_v4 = vpop.permute.xlu1 %788  ;;  %v757_v48 = vadd.f32 %v741_v1, %v331_v43 }
 0x24e   : > { %v829_v28 = vadd.f32 %v789_v4, %v749_v16 }
 0x24f   : > { %844 = vst.msk [vmem:[%s1804_s8 + $0x30] sm:$0xff] %vm371_vm0, %v828_v24 }
 0x250   : > { %845 = vst.msk [vmem:[%s1804_s8 + $0x38] sm:$0xff] %vm371_vm0, %v829_v28  ;;  %v783_v31 = vpop.permute.xlu0 %782 }
 0x251   : > { %v826_v35 = vadd.f32 %v783_v31, %v746_v18  ;;  %v785_v34 = vpop.permute.xlu1 %784 }
 0x252   : > { %v827_v14 = vadd.f32 %v785_v34, %v747_v27 }
 0x253   : > { %842 = vst.msk [vmem:[%s1804_s8 + $0x20] sm:$0xff] %vm371_vm0, %v826_v35 }
 0x254   : > { %843 = vst.msk [vmem:[%s1804_s8 + $0x28] sm:$0xff] %vm371_vm0, %v827_v14  ;;  %v795_v15 = vpop.permute.xlu0 %794 }
 0x255   : > { %v832_v44 = vadd.f32 %v795_v15, %v752_v36  ;;  %v797_v29 = vpop.permute.xlu1 %796 }
 0x256   : > { %v833_v21 = vadd.f32 %v797_v29, %v753_v40 }
 0x257   : > { %848 = vst.msk [vmem:[%s1804_s8 + $0x50] sm:$0xff] %vm371_vm0, %v832_v44 }
 0x258   : > { %849 = vst.msk [vmem:[%s1804_s8 + $0x58] sm:$0xff] %vm371_vm0, %v833_v21  ;;  %v791_v13 = vpop.permute.xlu0 %790 }
 0x259   : > { %v830_v22 = vadd.f32 %v791_v13, %v750_v50  ;;  %v793_v55 = vpop.permute.xlu1 %792 }
 0x25a   : > { %v831_v46 = vadd.f32 %v793_v55, %v751_v54 }
 0x25b   : > { %846 = vst.msk [vmem:[%s1804_s8 + $0x40] sm:$0xff] %vm371_vm0, %v830_v22 }
 0x25c   : > { %847 = vst.msk [vmem:[%s1804_s8 + $0x48] sm:$0xff] %vm371_vm0, %v831_v46  ;;  %v799_v25 = vpop.permute.xlu0 %798 }
 0x25d   : > { %v834_v62 = vadd.f32 %v799_v25, %v754_v61 }
 0x25e   : > { %v801_v57 = vpop.permute.xlu1 %800 }
 0x25f   : > { %850 = vst.msk [vmem:[%s1804_s8 + $0x60] sm:$0xff] %vm371_vm0, %v834_v62  ;;  %v835_v26 = vadd.f32 %v801_v57, %v755_v0 }
 0x260   : > { %v803_v59 = vpop.permute.xlu0 %802 }
 0x261   : > { %851 = vst.msk [vmem:[%s1804_s8 + $0x68] sm:$0xff] %vm371_vm0, %v835_v26  ;;  %v836_v5 = vadd.f32 %v803_v59, %v756_v58 }
 0x262   : > { %v805_v60 = vpop.permute.xlu1 %804 }
 0x263   : > { %852 = vst.msk [vmem:[%s1804_s8 + $0x70] sm:$0xff] %vm371_vm0, %v836_v5  ;;  %v837_v8 = vadd.f32 %v805_v60, %v757_v48 }
 0x265   : > { %853 = vst.msk [vmem:[%s1804_s8 + $0x78] sm:$0xff] %vm371_vm0, %v837_v8 }
 0x2f3   : > { %v972_v9 = vpop.f32.mrb[0].mxu0 }
 0x2f4   : > { %976 = vst [vmem:[%s279_s19] sm:$0x1] %v972_v9  ;;  %v1244_v10 = vpop.f32.mrb[1].mxu0 }
 0x2f5   : > { %1402 = shalt.err (!%p1399_p3)
}
 0x2f6   : > { %s1403_s15 = scalar_lea.hbm %s1878_s16, 16  ;;  %s1407_s8 = scalar_lea.hbm %s1925_s7, 32 }
 0x2f7   : > { %p1404_p4 = scmp.ne.s32.totalorder %s1878_s16, %s1403_s15  ;;  %p1408_p9 = scmp.lt.u32.totalorder %s1878_s16, %s1925_s7 }
 0x2f8   : > { %p1409_p10 = scmp.lt.u32.totalorder %s1407_s8, %s1403_s15  ;;  %p1411_p12 = scmp.lt.u32.totalorder %s1403_s15, %s1878_s16 }
 0x2f9   : > { %p1405_p7 = pnand %p1404_p4, %p1533_p5 }
 0x2fa   : > { %p1410_p11 = por %p1409_p10, %p1408_p9 }
 0x2fb   : > { %p1406_p8 = pneg %p1405_p7 }
 0x2fc   : > { %p1412_p13 = por %p1411_p12, %p1410_p11 }
 0x2fe   : > { %p1413_p0 = pnand %p1412_p13, %p1406_p8 }
 0x300   : > { %1416 = shalt.err (!%p1413_p0)
}
 0x301   : > { %1277 = dma.vmem_to_hbm [thread:$0]  (%p1533_p5), %s1872_s9, 16, %s1878_s16, %s983_s17  }
 0x302 PF: > { %p1283_p1 = scmp.ge.s32.totalorder %s1451_s27, 2  ;;  %s1019_s13 = sand.u32 1, %s1439_s24  }
 0x303   : > { %s1020_s14 = scalar_lea.sflag [#allocation3], %s1019_s13 }
 0x304   : > { %p1280_p2 = pnand %p1283_p1, %p1537_p6 }
 0x306   : > { %1434 = dma.done.wait (!%p1280_p2), %s1020_s14, 16  }
 0x307   : > { %1436 = vsyncadd (!%p1280_p2), %s1020_s14, 4294967280  ;;  %p18_p3 = scmp.ge.s32.totalorder %s1521_s30, 4   ;;  %s1930_s24 = smov %s1443_s25 }
 0x308   : > { %s1931_s25 = smov %s1447_s26  ;;  %s1932_s26 = smov %s1531_s10 }
 0x309   : > { %s1933_s27 = smov %s1521_s30  ;;  %20 = sbr.rel (!%p18_p3) target bundleno = 3 (0x3), region = 91 }
 0x310   :  { %1024 = vsyncpa [#allocation3], 1 }
 0x311   :  { %1026 = vsyncpa [#allocation3 + $0x1], 1 }

</bundles_post_ra>
